<compile_context>
chip_gen: v7x
topology: tpu7x:2x2x1
jax: 0.10.0
libtpu: 0.0.40
codegen_flags: <defaults>
</compile_context>

<pallas_src>
import functools
import math

import jax
import jax.numpy as jnp
from jax.experimental import pallas as pl
from jax.experimental.pallas import tpu as pltpu

_TARGET_TILE_ROWS = 4096   # ~2 MiB of f32 real data per grid step
_MIN_TILE_ROWS = 1024      # ~0.5 MiB f32 -- measured amortization knee
_MIN_TILES = 8             # keep >= 8 tiles on big inputs so v7x's 2 TCs stay busy
_MAX_PATTERN_ROWS = 4096   # above this pattern period, rebuild the pattern in-kernel


def _round_up(x, m):
    return ((x + m - 1) // m) * m


def _round_down(x, m):
    return (x // m) * m


def _ccl_body(y_ref, o_ref, a, *, margin, neg_scale, fold_scale,
              tile_rows, total, num_tiles):
    """Fused hot path for one (tile_rows, 128) lane-dense tile."""
    y = y_ref[...].astype(jnp.float32)            # in-kernel upcast (bf16 -> f32)

    # Per-element offset (and, if needed, post-relu scale) derived from sign(A):
    #   positive column:  relu(1 - y)            == relu(y * (-1) + 1)
    #   negative column:  relu(y - margin) * s   == relu(y * s - margin * s)  (s >= 0)
    if fold_scale:                                # common case: neg_scale >= 0
        b = jnp.where(a < 0.0, 1.0, -margin * neg_scale)
        contrib = jnp.maximum(y * a + b, 0.0)
    else:                                         # pathological negative weight
        b = jnp.where(a < 0.0, 1.0, -margin)
        scl = jnp.where(a < 0.0, 1.0, neg_scale)
        contrib = jnp.maximum(y * a + b, 0.0) * scl

    # Rows-only reduction -> lane-dense (1, 128) per-lane partial sums.
    partial = jnp.sum(contrib, axis=0, keepdims=True)

    last = num_tiles - 1
    rem = total - last * tile_rows * 128          # valid elements in the last tile
    if rem == tile_rows * 128:                    # no padded tail anywhere
        o_ref[...] = partial
    else:
        pid = pl.program_id(0)

        @pl.when(pid != last)                     # unmasked fast path
        def _():
            o_ref[...] = partial

        @pl.when(pid == last)                     # masked tail, last tile only
        def _():
            r = jax.lax.broadcasted_iota(jnp.int32, (tile_rows, 128), 0)
            l = jax.lax.broadcasted_iota(jnp.int32, (tile_rows, 128), 1)
            valid = (r * 128 + l) < rem
            o_ref[...] = jnp.sum(jnp.where(valid, contrib, 0.0),
                                 axis=0, keepdims=True)


def _ccl_kernel_const(a_ref, y_ref, o_ref, **kw):
    # Slope constants precomputed in the wrapper; the same block serves every tile.
    _ccl_body(y_ref, o_ref, a_ref[...], **kw)


def _ccl_kernel_inline(y_ref, o_ref, *, width, **kw):
    # Fallback for huge pattern periods: rebuild the slope pattern per tile.
    tile_rows = kw["tile_rows"]
    neg_slope = kw["neg_scale"] if kw["fold_scale"] else 1.0
    base = (pl.program_id(0) * ((tile_rows * 128) % width)) % width
    r = jax.lax.broadcasted_iota(jnp.int32, (tile_rows, 128), 0)
    l = jax.lax.broadcasted_iota(jnp.int32, (tile_rows, 128), 1)
    is_pos = ((base + r * 128 + l) % width) == 0
    a = jnp.where(is_pos, jnp.float32(-1.0), jnp.float32(neg_slope))
    _ccl_body(y_ref, o_ref, a, **kw)


def cosine_contrastive_loss(y_pred, margin=0.0, negative_weight=None,
                            target_tile_rows=None, _force_inline_pattern=False):
    """Pallas TPU implementation of CosineContrastiveLoss.forward (scalar loss)."""
    batch, width = y_pred.shape
    num_negs = width - 1
    margin = float(margin)

    # NOTE: Python truthiness on purpose, to match the PyTorch module exactly
    # (`if self._negative_weight:` -> 0 / 0.0 / None all take the `sum` branch).
    if negative_weight and num_negs > 0:
        neg_scale = float(negative_weight) / num_negs   # mean * w == sum * w/num_negs
    else:
        neg_scale = 1.0
    fold_scale = neg_scale >= 0.0                       # relu(x)*s == relu(x*s) needs s >= 0

    total = batch * width
    rows_needed = -(-total // 128)

    # --- tile sizing (validated: always a multiple of the sublane packing) -----
    sub = 16 if y_pred.dtype == jnp.bfloat16 else 8     # bf16 packs (16, 128)
    period = width // math.gcd(128, width)              # row period of the column pattern
    row_align = (sub * period) // math.gcd(sub, period)  # lcm(sub, period)
    use_const_input = (row_align <= _MAX_PATTERN_ROWS) and not _force_inline_pattern
    if not use_const_input:
        row_align = sub                                  # only sublane alignment needed

    target = _TARGET_TILE_ROWS if target_tile_rows is None else int(target_tile_rows)
    desired = max(row_align, _round_down(max(target, row_align), row_align))
    if rows_needed <= desired:
        tile_rows = _round_up(max(rows_needed, 1), row_align)       # single tile
    else:
        # Large input: keep >= _MIN_TILES tiles for megacore parallelism, but never
        # shrink a tile below the ~0.5 MiB amortization knee.
        floor_rows = _round_up(min(_MIN_TILE_ROWS, desired), row_align)
        by_parallel = _round_down(rows_needed // _MIN_TILES, row_align)
        tile_rows = min(desired, max(by_parallel, floor_rows))
    num_tiles = -(-rows_needed // tile_rows)
    padded_rows = num_tiles * tile_rows
    padded_total = padded_rows * 128

    # --- lane-dense view of the input (pads are exactly masked in-kernel) -------
    flat = y_pred.reshape(-1)
    if padded_total > total:
        flat = jnp.pad(flat, (0, padded_total - total))
    y2d = flat.reshape(padded_rows, 128)

    kw = dict(margin=margin, neg_scale=neg_scale, fold_scale=fold_scale,
              tile_rows=tile_rows, total=total, num_tiles=num_tiles)
    out_shape = jax.ShapeDtypeStruct((num_tiles, 128), jnp.float32)
    y_spec = pl.BlockSpec((tile_rows, 128), lambda i: (i, 0))
    out_spec = pl.BlockSpec((1, 128), lambda i: (i, 0))
    cparams = pltpu.CompilerParams(dimension_semantics=("parallel",))

    if use_const_input:
        # Slope constants: -1 at positive-column positions, +neg_slope elsewhere.
        # tile_rows is a multiple of the pattern period, so one block is valid for
        # every tile; its index_map is constant -> the pipeline fetches it once per
        # core instead of per step.
        row = jnp.arange(tile_rows, dtype=jnp.int32)[:, None]
        lane = jnp.arange(128, dtype=jnp.int32)[None, :]
        is_pos = ((row * 128 + lane) % width) == 0
        neg_slope = neg_scale if fold_scale else 1.0
        a_const = jnp.where(is_pos, jnp.float32(-1.0), jnp.float32(neg_slope))

        partials = pl.pallas_call(
            functools.partial(_ccl_kernel_const, **kw),
            out_shape=out_shape,
            grid_spec=pl.GridSpec(
                grid=(num_tiles,),
                in_specs=[pl.BlockSpec((tile_rows, 128), lambda i: (0, 0)), y_spec],
                out_specs=out_spec),
            compiler_params=cparams,
        )(a_const, y2d)
    else:
        partials = pl.pallas_call(
            functools.partial(_ccl_kernel_inline, width=width, **kw),
            out_shape=out_shape,
            grid_spec=pl.GridSpec(grid=(num_tiles,), in_specs=[y_spec],
                                  out_specs=out_spec),
            compiler_params=cparams,
        )(y2d)

    # Tiny epilogue: sum the (num_tiles, 128) per-lane partials, mean over batch.
    return jnp.sum(partials) / batch


def _reference(y_pred, margin=0.0, negative_weight=None):
    y = y_pred.astype(jnp.float32)
    pos_loss = jnp.maximum(1.0 - y[:, 0], 0.0)
    neg_loss = jnp.maximum(y[:, 1:] - margin, 0.0)
    if negative_weight:
        loss = pos_loss + neg_loss.mean(axis=-1) * negative_weight
    else:
        loss = pos_loss + neg_loss.sum(axis=-1)
    return loss.mean()


if __name__ == "__main__":
    key = jax.random.PRNGKey(0)
    k1, k2, k3 = jax.random.split(key, 3)

    # Small shape matching the module: (batch, 1 + num_negs).
    batch, num_negs = 8, 8
    y_pred = jax.random.uniform(k1, (batch, 1 + num_negs), minval=-1.0, maxval=1.0,
                                dtype=jnp.float32)

    # 1) Default config: margin=0, negative_weight=None (sum over negatives).
    loss = cosine_contrastive_loss(y_pred)
    jax.block_until_ready(loss)
    ref = _reference(y_pred)
    assert jnp.allclose(loss, ref, atol=1e-5), (loss, ref)

    # 2) Weighted branch (mean over negatives * negative_weight), nonzero margin.
    loss_w = cosine_contrastive_loss(y_pred, margin=0.1, negative_weight=0.5)
    jax.block_until_ready(loss_w)
    ref_w = _reference(y_pred, margin=0.1, negative_weight=0.5)
    assert jnp.allclose(loss_w, ref_w, atol=1e-5), (loss_w, ref_w)

    # 3) Multi-tile parallel grid with a masked tail (small tiles forced for test).
    y_big = jax.random.uniform(k2, (1536, 1 + num_negs), minval=-1.0, maxval=1.0,
                               dtype=jnp.float32)
    loss_t = cosine_contrastive_loss(y_big, margin=0.05, negative_weight=1.5,
                                     target_tile_rows=72)
    jax.block_until_ready(loss_t)
    ref_t = _reference(y_big, margin=0.05, negative_weight=1.5)
    assert jnp.allclose(loss_t, ref_t, atol=1e-5), (loss_t, ref_t)

    # 4) bf16 input: DMA'd as bf16 (16-row aligned tiles), upcast inside the kernel.
    loss_bf = cosine_contrastive_loss(y_pred.astype(jnp.bfloat16))
    jax.block_until_ready(loss_bf)
    ref_bf = _reference(y_pred.astype(jnp.bfloat16))
    assert jnp.allclose(loss_bf, ref_bf, atol=1e-4), (loss_bf, ref_bf)

    # 5) Fallback path (pattern rebuilt in-kernel) + unfoldable negative weight.
    y_mid = jax.random.uniform(k3, (300, 1 + num_negs), minval=-1.0, maxval=1.0,
                               dtype=jnp.float32)
    loss_i = cosine_contrastive_loss(y_mid, margin=0.2, negative_weight=-0.5,
                                     _force_inline_pattern=True)
    jax.block_until_ready(loss_i)
    ref_i = _reference(y_mid, margin=0.2, negative_weight=-0.5)
    assert jnp.allclose(loss_i, ref_i, atol=1e-5), (loss_i, ref_i)

    print("KERNEL_OK")
</pallas_src>

<mosaic_0001>
module attributes {stable_mosaic.version = 11 : i64} {
  func.func @_ccl_kernel_const(%arg0: i32, %arg1: memref<72x128xf32, #tpu.memory_space<vmem>>, %arg2: memref<72x128xf32, #tpu.memory_space<vmem>>, %arg3: memref<1x128xf32, #tpu.memory_space<vmem>>) attributes {dimension_semantics = [#tpu.dimension_semantics<parallel>], iteration_bounds = array<i64: 1>, scalar_prefetch = 0 : i64, scratch_operands = 0 : i64, tpu.core_type = #tpu.core_type<tc>, window_params = [{pipeline_mode = #tpu.pipeline_mode<synchronous>, transform_indices = @transform_0, window_bounds = array<i64: 72, 128>}, {transform_indices = @transform_1, window_bounds = array<i64: 72, 128>}, {transform_indices = @transform_2, window_bounds = array<i64: 1, 128>}]} {
    %c0 = arith.constant 0 : index
    %c0_0 = arith.constant 0 : index
    %0 = vector.load %arg1[%c0, %c0_0] : memref<72x128xf32, #tpu.memory_space<vmem>>, vector<72x128xf32>
    %c0_1 = arith.constant 0 : index
    %c0_2 = arith.constant 0 : index
    %1 = vector.load %arg2[%c0_1, %c0_2] : memref<72x128xf32, #tpu.memory_space<vmem>>, vector<72x128xf32>
    %cst = arith.constant 0.000000e+00 : f32
    %2 = vector.broadcast %cst : f32 to vector<72x128xf32>
    %3 = arith.cmpf olt, %0, %2 : vector<72x128xf32>
    %cst_3 = arith.constant 1.000000e+00 : f32
    %cst_4 = arith.constant -0.000000e+00 : f32
    %4 = vector.broadcast %cst_3 : f32 to vector<72x128xf32>
    %5 = vector.broadcast %cst_4 : f32 to vector<72x128xf32>
    %6 = arith.select %3, %4, %5 : vector<72x128xi1>, vector<72x128xf32>
    %7 = arith.mulf %1, %0 : vector<72x128xf32>
    %8 = arith.addf %7, %6 : vector<72x128xf32>
    %cst_5 = arith.constant 0.000000e+00 : f32
    %9 = vector.broadcast %cst_5 : f32 to vector<72x128xf32>
    %10 = arith.maximumf %8, %9 : vector<72x128xf32>
    %cst_6 = arith.constant dense<0.000000e+00> : vector<128xf32>
    %11 = vector.multi_reduction <add>, %10, %cst_6 [0] : vector<72x128xf32> to vector<128xf32>
    %12 = vector.shape_cast %11 : vector<128xf32> to vector<1x128xf32>
    %c0_i32 = arith.constant 0 : i32
    %13 = arith.cmpi ne, %arg0, %c0_i32 : i32
    %14 = arith.extui %13 : i1 to i32
    %c0_i32_7 = arith.constant 0 : i32
    %15 = arith.cmpi ne, %14, %c0_i32_7 : i32
    scf.if %15 {
      %c0_10 = arith.constant 0 : index
      %c0_11 = arith.constant 0 : index
      %19 = vector.load %arg3[%c0_10, %c0_11] : memref<1x128xf32, #tpu.memory_space<vmem>>, vector<1x128xf32>
      tpu.vector_store %arg3[%c0_10, %c0_11], %12 {strides = array<i32>} : memref<1x128xf32, #tpu.memory_space<vmem>>, vector<1x128xf32>,
    } else {
    }
    %c0_i32_8 = arith.constant 0 : i32
    %16 = arith.cmpi eq, %arg0, %c0_i32_8 : i32
    %17 = arith.extui %16 : i1 to i32
    %c0_i32_9 = arith.constant 0 : i32
    %18 = arith.cmpi ne, %17, %c0_i32_9 : i32
    scf.if %18 {
      %19 = tpu.iota {dimensions = array<i32: 0>} : vector<72x128xi32>
      %20 = tpu.iota {dimensions = array<i32: 1>} : vector<72x128xi32>
      %c128_i32 = arith.constant 128 : i32
      %21 = vector.broadcast %c128_i32 : i32 to vector<72x128xi32>
      %22 = arith.muli %19, %21 : vector<72x128xi32>
      %23 = arith.addi %22, %20 : vector<72x128xi32>
      %c72_i32 = arith.constant 72 : i32
      %24 = vector.broadcast %c72_i32 : i32 to vector<72x128xi32>
      %25 = arith.cmpi slt, %23, %24 : vector<72x128xi32>
      %cst_10 = arith.constant 0.000000e+00 : f32
      %26 = vector.broadcast %cst_10 : f32 to vector<72x128xf32>
      %27 = arith.select %25, %10, %26 : vector<72x128xi1>, vector<72x128xf32>
      %cst_11 = arith.constant dense<0.000000e+00> : vector<128xf32>
      %28 = vector.multi_reduction <add>, %27, %cst_11 [0] : vector<72x128xf32> to vector<128xf32>
      %29 = vector.shape_cast %28 : vector<128xf32> to vector<1x128xf32>
      %c0_12 = arith.constant 0 : index
      %c0_13 = arith.constant 0 : index
      %30 = vector.load %arg3[%c0_12, %c0_13] : memref<1x128xf32, #tpu.memory_space<vmem>>, vector<1x128xf32>
      tpu.vector_store %arg3[%c0_12, %c0_13], %29 {strides = array<i32>} : memref<1x128xf32, #tpu.memory_space<vmem>>, vector<1x128xf32>,
    } else {
    }
    return
  }
  func.func @transform_0(%arg0: i32) -> (i32, i32) {
    %c0_i32 = arith.constant 0 : i32
    %c0_i32_0 = arith.constant 0 : i32
    %c0_i32_1 = arith.constant 0 : i32
    return %c0_i32, %c0_i32_0 : i32, i32
  }
  func.func @transform_1(%arg0: i32) -> (i32, i32) {
    %c0_i32 = arith.constant 0 : i32
    %c0_i32_0 = arith.constant 0 : i32
    return %arg0, %c0_i32 : i32, i32
  }
  func.func @transform_2(%arg0: i32) -> (i32, i32) {
    %c0_i32 = arith.constant 0 : i32
    %c0_i32_0 = arith.constant 0 : i32
    return %arg0, %c0_i32 : i32, i32
  }
}

</mosaic_0001>

<bundles_post_ra>
// kernel: tpu_custom_call.1
= control target key start
LH: loop header
LB: loop body
LE: loop exit
PB: predicated region body
PF: predicated region fallthrough
CT: control target
= control target key end

     0   :  { %7 = vsyncpa [#allocation3], 0  ;;  %s371_s0 = inlined_call_operand.hbm [shape: f32[72,128], index: 0, kind: input, shape index: {}]   ;;  %s372_s1 = inlined_call_operand.hbm [shape: f32[72,128], index: 1, kind: input, shape index: {}]   ;;  %s373_s2 = inlined_call_operand.hbm [shape: f32[1,128], index: 2, kind: output, shape index: {}]  }
   0x1   :  { %8 = vsyncpa [#allocation6], 0 }
   0x2   :  { %9 = vsyncpa [#allocation4], 0  ;;  %s283_s9 = smov [#allocation2]   ;;  %s211_s13 = scalar_lea.hbm %s371_s0, 1152 }
   0x3   :  { %s15_s10 = sshll.u32 %s283_s9, 4  ;;  %p212_p0 = scmp.ne.s32.totalorder %s371_s0, %s211_s13  ;;  %s16_s10 = int_to_ptr.vmem [resolvable:$true] %s15_s10 }
   0x4   :  { %p215_p1 = scmp.lt.u32.totalorder %s211_s13, %s371_s0 }
   0x6   :  { %p217_p2 = pnand %p215_p1, %p212_p0 }
   0x8   :  { %220 = shalt.err (!%p217_p2)
}
   0x9   :  { %s221_s18 = scalar_lea.vmem %s16_s10, 1152  ;;  %p226_p4 = scmp.lt.s32.totalorder %s16_s10, %s16_s10 }
   0xa   :  { %p222_p3 = scmp.ne.s32.totalorder %s16_s10, %s221_s18  ;;  %p227_p5 = scmp.lt.s32.totalorder %s221_s18, %s221_s18 }
   0xc   :  { %p228_p6 = por %p227_p5, %p226_p4 }
   0xe   :  { %p229_p7 = pnand %p228_p6, %p222_p3 }
  0x10   :  { %232 = shalt.err (!%p229_p7)
}
  0x11   :  { %s284_s19 = smov 128   ;;  %s285_s20 = smov 8  }
  0x12   :  { %21 = dma.hbm_to_vmem [thread:$0]  %s371_s0, 1152, %s16_s10, [#allocation3], %s284_s19, %s284_s19, %s285_s20  }
  0x13   :  { %s286_s23 = smov [#allocation5]   ;;  %s233_s27 = scalar_lea.hbm %s372_s1, 1152 }
  0x14   :  { %s27_s24 = sshll.u32 %s286_s23, 4  ;;  %p234_p8 = scmp.ne.s32.totalorder %s372_s1, %s233_s27  ;;  %s28_s24 = int_to_ptr.vmem [resolvable:$true] %s27_s24 }
  0x15   :  { %p237_p9 = scmp.lt.u32.totalorder %s233_s27, %s372_s1 }
  0x17   :  { %p239_p10 = pnand %p237_p9, %p234_p8 }
  0x19   :  { %242 = shalt.err (!%p239_p10)
}
  0x1a   :  { %s243_s4 = scalar_lea.vmem %s28_s24, 1152  ;;  %p248_p12 = scmp.lt.s32.totalorder %s28_s24, %s28_s24 }
  0x1b   :  { %p244_p11 = scmp.ne.s32.totalorder %s28_s24, %s243_s4  ;;  %p249_p13 = scmp.lt.s32.totalorder %s243_s4, %s243_s4 }
  0x1d   :  { %p250_p0 = por %p249_p13, %p248_p12 }
  0x1f   :  { %p251_p1 = pnand %p250_p0, %p244_p11 }
  0x21   :  { %254 = shalt.err (!%p251_p1)
}
  0x22   :  { %33 = dma.hbm_to_vmem [thread:$0]  %s372_s1, 1152, %s28_s24, [#allocation6], %s284_s19, %s284_s19, %s285_s20  }
  0x23   :  { %277 = dma.done.wait [#allocation3], 1152  }
  0x24   :  { %278 = vsyncadd [#allocation3], 4294966144 }
  0x25   :  { %279 = dma.done.wait [#allocation6], 1152  }
  0x26   :  { %280 = vsyncadd [#allocation6], 4294966144  ;;  %v126_v0 = vlaneseq  ;;  %v40_v2 = vld [vmem:[#allocation2] sm:$0xff]  ;;  %v41_v3 = vld [vmem:[#allocation2 + $0x8] sm:$0xff]  ;;  %v287_v23 = vmov -0.0   ;;  %s288_s1 = smov [#allocation7]  }
  0x27   :  { %v42_v4 = vld [vmem:[#allocation2 + $0x10] sm:$0xff]  ;;  %v49_v6 = vld [vmem:[#allocation5] sm:$0xff]  ;;  %vm58_vm0 = vcmp.lt.f32.partialorder %v40_v2, 0.0  ;;  %vm59_vm1 = vcmp.lt.f32.partialorder %v41_v3, 0.0  ;;  %v43_v10 = vld [vmem:[#allocation2 + $0x18] sm:$0xff]  ;;  %s195_s6 = sshll.u32 %s288_s1, 4  ;;  %s196_s6 = int_to_ptr.vmem [resolvable:$true] %s195_s6 }
  0x28   :  { %v127_v1 = vshrl.u32 %v126_v0, 7  ;;  %v50_v7 = vld [vmem:[#allocation5 + $0x8] sm:$0xff]  ;;  %v328_v9 = vand.u32 127, %v126_v0  ;;  %v51_v11 = vld [vmem:[#allocation5 + $0x10] sm:$0xff]  ;;  %v44_v16 = vld [vmem:[#allocation2 + $0x20] sm:$0xff]  ;;  %vm60_vm2 = vcmp.lt.f32.partialorder %v42_v4, 0.0  ;;  %v76_v18 = vmul.f32 %v49_v6, %v40_v2  ;;  %p260_p3 = scmp.lt.s32.totalorder %s196_s6, %s196_s6 }
  0x29   :  { %v45_v17 = vld [vmem:[#allocation2 + $0x28] sm:$0xff]  ;;  %v77_v19 = vmul.f32 %v50_v7, %v41_v3  ;;  %v46_v21 = vld [vmem:[#allocation2 + $0x30] sm:$0xff]  ;;  %v52_v22 = vld [vmem:[#allocation5 + $0x18] sm:$0xff]  ;;  %v67_v24 = vsel %vm58_vm0, 1.0, %v287_v23  ;;  %v68_v25 = vsel %vm59_vm1, 1.0, %v287_v23  ;;  %vm61_vm3 = vcmp.lt.f32.partialorder %v43_v10, 0.0 }
  0x2a   :  { %v128_v5 = vadd.s32 8, %v127_v1  ;;  %v129_v8 = vadd.s32 16, %v127_v1  ;;  %v130_v12 = vadd.s32 24, %v127_v1  ;;  %v131_v13 = vadd.s32 32, %v127_v1  ;;  %v47_v28 = vld [vmem:[#allocation2 + $0x38] sm:$0xff]  ;;  %v48_v32 = vld [vmem:[#allocation2 + $0x40] sm:$0xff] }
  0x2b   :  { %v330_v14 = vadd.s32 40, %v127_v1  ;;  %v332_v15 = vadd.s32 48, %v127_v1  ;;  %v334_v20 = vadd.s32 56, %v127_v1  ;;  %v138_v26 = vmul.u32 128, %v127_v1  ;;  %v53_v33 = vld [vmem:[#allocation5 + $0x20] sm:$0xff]  ;;  %v54_v36 = vld [vmem:[#allocation5 + $0x28] sm:$0xff] }
  0x2c   :  { %v139_v27 = vmul.u32 128, %v128_v5  ;;  %v78_v29 = vmul.f32 %v51_v11, %v42_v4  ;;  %v338_v30 = vadd.s32 64, %v127_v1  ;;  %v140_v31 = vmul.u32 128, %v129_v8  ;;  %v55_v46 = vld [vmem:[#allocation5 + $0x30] sm:$0xff]  ;;  %v56_v51 = vld [vmem:[#allocation5 + $0x38] sm:$0xff]  ;;  %v57_v62 = vld [vmem:[#allocation5 + $0x40] sm:$0xff] }
  0x2d   :  { %vm62_vm4 = vcmp.lt.f32.partialorder %v44_v16, 0.0  ;;  %vm63_vm5 = vcmp.lt.f32.partialorder %v45_v17, 0.0  ;;  %v69_v34 = vsel %vm60_vm2, 1.0, %v287_v23  ;;  %v141_v35 = vmul.u32 128, %v130_v12  ;;  %s255_s7 = scalar_lea.vmem %s196_s6, 16  ;;  %s259_s8 = scalar_lea.vmem %s196_s6, 32 }
  0x2e   :  { %vm64_vm6 = vcmp.lt.f32.partialorder %v46_v21, 0.0  ;;  %v79_v37 = vmul.f32 %v52_v22, %v43_v10  ;;  %v85_v38 = vadd.f32 %v76_v18, %v67_v24  ;;  %v86_v39 = vadd.f32 %v77_v19, %v68_v25  ;;  %p256_p2 = scmp.ne.s32.totalorder %s196_s6, %s255_s7  ;;  %p261_p4 = scmp.lt.s32.totalorder %s259_s8, %s255_s7 }
  0x2f   :  { %vm65_vm7 = vcmp.lt.f32.partialorder %v47_v28, 0.0  ;;  %v70_v40 = vsel %vm61_vm3, 1.0, %v287_v23  ;;  %v147_v41 = vadd.s32 %v138_v26, %v328_v9  ;;  %v148_v42 = vadd.s32 %v139_v27, %v328_v9 }
  0x30   :  { %vm66_vm8 = vcmp.lt.f32.partialorder %v48_v32, 0.0  ;;  %v80_v43 = vmul.f32 %v53_v33, %v44_v16  ;;  %v87_v44 = vadd.f32 %v78_v29, %v69_v34  ;;  %v149_v45 = vadd.s32 %v140_v31, %v328_v9  ;;  %p262_p5 = por %p261_p4, %p260_p3 }
  0x31   :  { %v71_v47 = vsel %vm62_vm4, 1.0, %v287_v23  ;;  %v72_v48 = vsel %vm63_vm5, 1.0, %v287_v23  ;;  %v73_v49 = vsel %vm64_vm6, 1.0, %v287_v23  ;;  %v81_v50 = vmul.f32 %v54_v36, %v45_v17 }
  0x32   :  { %v88_v52 = vadd.f32 %v79_v37, %v70_v40  ;;  %v94_v53 = vmax.f32 %v85_v38, 0.0  ;;  %v95_v54 = vmax.f32 %v86_v39, 0.0  ;;  %v142_v55 = vmul.u32 128, %v131_v13  ;;  %p263_p6 = pnand %p262_p5, %p256_p2 }
  0x33   :  { %v143_v56 = vmul.u32 128, %v330_v14  ;;  %v150_v57 = vadd.s32 %v141_v35, %v328_v9  ;;  %vm156_vm9 = vcmp.lt.s32.totalorder %v147_v41, 72  ;;  %vm157_vm10 = vcmp.lt.s32.totalorder %v148_v42, 72 }
  0x34   :  { %v74_v58 = vsel %vm65_vm7, 1.0, %v287_v23  ;;  %v82_v59 = vmul.f32 %v55_v46, %v46_v21  ;;  %v89_v60 = vadd.f32 %v80_v43, %v71_v47  ;;  %v96_v61 = vmax.f32 %v87_v44, 0.0 }
  0x35   :  { %v83_v63 = vmul.f32 %v56_v51, %v47_v28  ;;  %v144_v0 = vmul.u32 128, %v332_v15  ;;  %v151_v1 = vadd.s32 %v142_v55, %v328_v9  ;;  %vm158_vm11 = vcmp.lt.s32.totalorder %v149_v45, 72 }
  0x36   :  { %v90_v2 = vadd.f32 %v81_v50, %v72_v48  ;;  %v97_v3 = vmax.f32 %v88_v52, 0.0  ;;  %v165_v4 = vsel %vm156_vm9, %v94_v53, 0.0  ;;  %v166_v5 = vsel %vm157_vm10, %v95_v54, 0.0 }
  0x37   :  { %v75_v6 = vsel %vm66_vm8, 1.0, %v287_v23  ;;  %v145_v7 = vmul.u32 128, %v334_v20  ;;  %v152_v8 = vadd.s32 %v143_v56, %v328_v9  ;;  %vm159_vm12 = vcmp.lt.s32.totalorder %v150_v57, 72 }
  0x38   :  { %v84_v10 = vmul.f32 %v57_v62, %v48_v32  ;;  %v91_v11 = vadd.f32 %v82_v59, %v73_v49  ;;  %v98_v12 = vmax.f32 %v89_v60, 0.0  ;;  %v167_v13 = vsel %vm158_vm11, %v96_v61, 0.0 }
  0x39   :  { %v146_v14 = vmul.u32 128, %v338_v30  ;;  %v153_v15 = vadd.s32 %v144_v0, %v328_v9  ;;  %vm160_vm13 = vcmp.lt.s32.totalorder %v151_v1, 72  ;;  %v174_v16 = vadd.f32 %v166_v5, %v165_v4 }
  0x3a   :  { %v92_v17 = vadd.f32 %v83_v63, %v74_v58  ;;  %v99_v18 = vmax.f32 %v90_v2, 0.0  ;;  %v168_v19 = vsel %vm159_vm12, %v97_v3, 0.0  ;;  %v154_v21 = vadd.s32 %v145_v7, %v328_v9 }
  0x3b   :  { %vm161_vm14 = vcmp.lt.s32.totalorder %v152_v8, 72  ;;  %v175_v20 = vadd.f32 %v174_v16, %v167_v13  ;;  %v93_v22 = vadd.f32 %v84_v10, %v75_v6  ;;  %v100_v23 = vmax.f32 %v91_v11, 0.0 }
  0x3c   :  { %v169_v24 = vsel %vm160_vm13, %v98_v12, 0.0  ;;  %v155_v25 = vadd.s32 %v146_v14, %v328_v9  ;;  %vm162_vm15 = vcmp.lt.s32.totalorder %v153_v15, 72  ;;  %v101_v27 = vmax.f32 %v92_v17, 0.0 }
  0x3d   :  { %v176_v26 = vadd.f32 %v175_v20, %v168_v19  ;;  %v170_v28 = vsel %vm161_vm14, %v99_v18, 0.0  ;;  %vm163_vm0 = vcmp.lt.s32.totalorder %v154_v21, 72  ;;  %v102_v30 = vmax.f32 %v93_v22, 0.0 }
  0x3e   :  { %v171_v31 = vsel %vm162_vm15, %v100_v23, 0.0  ;;  %vm164_vm1 = vcmp.lt.s32.totalorder %v155_v25, 72  ;;  %v172_v33 = vsel %vm163_vm0, %v101_v27, 0.0 }
  0x3f   :  { %v177_v29 = vadd.f32 %v176_v26, %v169_v24  ;;  %v173_v35 = vsel %vm164_vm1, %v102_v30, 0.0 }
  0x41   :  { %v178_v32 = vadd.f32 %v177_v29, %v170_v28 }
  0x43   :  { %v179_v34 = vadd.f32 %v178_v32, %v171_v31 }
  0x45   :  { %v180_v36 = vadd.f32 %v179_v34, %v172_v33 }
  0x47   :  { %v181_v37 = vadd.f32 %v180_v36, %v173_v35 }
  0x49   :  { %v182_v38 = vrot.slane %v181_v37, 4 }
  0x4b   :  { %v183_v39 = vadd.f32 %v182_v38, %v181_v37 }
  0x4d   :  { %v184_v40 = vrot.slane %v183_v39, 2 }
  0x4f   :  { %v185_v41 = vadd.f32 %v184_v40, %v183_v39 }
  0x51   :  { %v186_v9 = vrot.slane %v185_v41, 1 }
  0x53   :  { %v187_v42 = vadd.f32 %v186_v9, %v185_v41 }
  0x55   :  { %188 = vst [vmem:[#allocation7] sm:$0x1] %v187_v42 }
  0x56   :  { %266 = shalt.err (!%p263_p6)
}
  0x57   :  { %s267_s11 = scalar_lea.hbm %s373_s2, 16 }
  0x58   :  { %p268_p7 = scmp.ne.s32.totalorder %s373_s2, %s267_s11  ;;  %p271_p8 = scmp.lt.u32.totalorder %s267_s11, %s373_s2 }
  0x5a   :  { %p273_p9 = pnand %p271_p8, %p268_p7 }
  0x5c   :  { %276 = shalt.err (!%p273_p9)
}
  0x5d   :  { %198 = dma.vmem_to_hbm [thread:$0]  %s196_s6, 16, %s373_s2, [#allocation4]  }
  0x5e   :  { %281 = dma.done.wait [#allocation4], 16  }
  0x5f   :  { %282 = vsyncadd [#allocation4], 4294967280 }
  0x60   :  { %202 = vsyncpa [#allocation3], 1 }
  0x61   :  { %203 = vsyncpa [#allocation6], 1 }
  0x62   :  { %204 = vsyncpa [#allocation4], 1 }

</bundles_post_ra>
